<compile_context>
chip_gen: v7x
topology: tpu7x:2x2x1
jax: 0.10.0
libtpu: 0.0.40
codegen_flags: <defaults>
</compile_context>

<pallas_src>
import jax
import jax.numpy as jnp
from jax.experimental import pallas as pl
from jax.experimental.pallas import tpu as pltpu


# Coefficients of each of the 16 binary ops in the basis (1, a, b, a*b):
#   op_i(a, b) = C[i,0] + C[i,1]*a + C[i,2]*b + C[i,3]*a*b
_GATE_COEFFS = [
    #  1    a    b   ab
    [0.0,  0.0,  0.0,  0.0],   # 0:  false
    [0.0,  0.0,  0.0,  1.0],   # 1:  a AND b
    [0.0,  1.0,  0.0, -1.0],   # 2:  a AND NOT b
    [0.0,  1.0,  0.0,  0.0],   # 3:  a
    [0.0,  0.0,  1.0, -1.0],   # 4:  NOT a AND b
    [0.0,  0.0,  1.0,  0.0],   # 5:  b
    [0.0,  1.0,  1.0, -2.0],   # 6:  a XOR b
    [0.0,  1.0,  1.0, -1.0],   # 7:  a OR b
    [1.0, -1.0, -1.0,  1.0],   # 8:  NOR
    [1.0, -1.0, -1.0,  2.0],   # 9:  XNOR
    [1.0,  0.0, -1.0,  0.0],   # 10: NOT b
    [1.0,  0.0, -1.0,  1.0],   # 11: a OR NOT b
    [1.0, -1.0,  0.0,  0.0],   # 12: NOT a
    [1.0, -1.0,  0.0,  1.0],   # 13: NOT a OR b
    [1.0,  0.0,  0.0, -1.0],   # 14: NAND
    [1.0,  0.0,  0.0,  0.0],   # 15: true
]

_MAX_TILE_B = 1024   # multiple of 8
_MAX_TILE_O = 2048   # multiple of 128


def _logic_layer_kernel(a_ref, b_ref, k_ref, o_ref):
    # a_ref, b_ref: [TB, TO]  gathered inputs for this (batch, neuron) tile (bf16 or f32)
    # k_ref:        [4,  TO]  precomputed affine coefficients (f32)
    # o_ref:        [TB, TO]  output tile (bf16 or f32)
    a = a_ref[...].astype(jnp.float32)
    b = b_ref[...].astype(jnp.float32)
    k = k_ref[...]                      # [4, TO], f32

    k0 = k[0][None, :]
    k1 = k[1][None, :]
    k2 = k[2][None, :]
    k3 = k[3][None, :]

    # Factored:  k0 + k1*a + k2*b + k3*a*b  ==  (k0 + k2*b) + a*(k1 + k3*b)
    out = (k0 + k2 * b) + a * (k1 + k3 * b)
    o_ref[...] = out.astype(o_ref.dtype)


def _round_up(x, m):
    return ((x + m - 1) // m) * m


def _choose_tiles(batch, out_dim):
    """Lane-dense tiles capped for a <=48 MiB double-buffered VMEM plan; cdiv-friendly."""
    tile_b = batch if batch <= _MAX_TILE_B else _MAX_TILE_B       # full dim or mult of 8
    tile_o = out_dim if out_dim <= _MAX_TILE_O else _MAX_TILE_O   # full dim or mult of 128
    # Keep >=2 grid steps on non-trivial problems so both v7x TensorCores get work.
    if pl.cdiv(batch, tile_b) * pl.cdiv(out_dim, tile_o) == 1:
        if out_dim >= 256:
            tile_o = _round_up(pl.cdiv(out_dim, 2), 128)
        elif batch >= 16:
            tile_b = _round_up(pl.cdiv(batch, 2), 8)
    return tile_b, tile_o


def logic_layer_forward(x, weights, idx_a, idx_b, *, tile_b=None, tile_o=None,
                        io_dtype=jnp.bfloat16, out_dtype=jnp.bfloat16):
    """
    x:       [batch, in_dim] float32
    weights: [out_dim, 16]   float32 (pre-softmax, like the nn.Parameter)
    idx_a:   [out_dim] int32
    idx_b:   [out_dim] int32
    io_dtype / out_dtype: dtypes at the kernel boundary. Defaults (bf16) halve HBM traffic
        of this purely bandwidth-bound op but introduce ~1e-2 relative error; pass
        jnp.float32 for both to match the PyTorch forward to f32 rounding.
    returns: [batch, out_dim] out_dtype
    """
    batch, _ = x.shape
    out_dim = weights.shape[0]

    # --- batch-independent precompute: softmax over gates folded into 4 affine coeffs ---
    coeffs = jnp.asarray(_GATE_COEFFS, dtype=jnp.float32)            # [16, 4]
    wp = jax.nn.softmax(weights.astype(jnp.float32), axis=-1)        # [out_dim, 16]
    # tiny contraction; broadcast-sum avoids TPU default-precision matmul surprises
    k = jnp.sum(wp[:, :, None] * coeffs[None, :, :], axis=1).T       # [4, out_dim] f32

    # --- gather the two wired inputs per neuron (index plumbing; XLA may fuse this
    #     into the Pallas input DMA via allow_input_fusion below) ---
    xc = x.astype(io_dtype)
    a = jnp.take(xc, idx_a, axis=-1)                                 # [batch, out_dim]
    b = jnp.take(xc, idx_b, axis=-1)                                 # [batch, out_dim]

    # --- tiling: 2-D grid over (batch, out_dim), partial edge blocks handled by Pallas ---
    tb, to = _choose_tiles(batch, out_dim)
    if tile_b is not None:
        tb = tile_b
    if tile_o is not None:
        to = tile_o
    grid = (pl.cdiv(batch, tb), pl.cdiv(out_dim, to))

    return pl.pallas_call(
        _logic_layer_kernel,
        out_shape=jax.ShapeDtypeStruct((batch, out_dim), out_dtype),
        grid_spec=pltpu.PrefetchScalarGridSpec(
            num_scalar_prefetch=0,
            grid=grid,
            in_specs=[
                pl.BlockSpec((tb, to), lambda i, j: (i, j)),
                pl.BlockSpec((tb, to), lambda i, j: (i, j)),
                pl.BlockSpec((4, to), lambda i, j: (0, j)),
            ],
            out_specs=pl.BlockSpec((tb, to), lambda i, j: (i, j)),
        ),
        compiler_params=pltpu.CompilerParams(
            dimension_semantics=("parallel", "parallel"),
            # Worst-case plan (1024 x 2048, f32 out, double-buffered) is ~32 MiB;
            # 48 MiB fits under v7x's 64 MiB physical VMEM and overrides the
            # smaller scoped defaults on v5e/v6e.
            vmem_limit_bytes=48 * 1024 * 1024,
            # Let XLA fuse the take()+cast producers of a/b into the input DMA so the
            # gathered operands are not round-tripped through HBM. k stays materialized.
            allow_input_fusion=[True, True, False],
        ),
    )(a, b, k)


def logic_layer_reference(x, weights, idx_a, idx_b):
    """Pure-JAX reference matching the PyTorch forward (training mode)."""
    a = jnp.take(x, idx_a, axis=-1)
    b = jnp.take(x, idx_b, axis=-1)
    wp = jax.nn.softmax(weights, axis=-1)  # [out_dim, 16]
    ab = a * b
    ops = jnp.stack(
        [
            jnp.zeros_like(a), ab, a - ab, a, b - ab, b,
            a + b - 2 * ab, a + b - ab, 1 - (a + b - ab), 1 - (a + b - 2 * ab),
            1 - b, 1 - b + ab, 1 - a, 1 - a + ab, 1 - ab, jnp.ones_like(a),
        ],
        axis=-1,
    )  # [batch, out_dim, 16]
    return jnp.sum(wp[None, :, :] * ops, axis=-1)


def _make_inputs(key, batch, in_dim, out_dim):
    k_x, k_w, k_p1, k_p2 = jax.random.split(key, 4)
    # Deterministic "random" connections, mirroring get_connections('random'):
    #   c = randperm(2*out_dim) % in_dim ; c = randperm(in_dim)[c] ; a, b = c.reshape(2, out_dim)
    assert out_dim * 2 >= in_dim
    c = jax.random.permutation(k_p1, 2 * out_dim) % in_dim
    perm_in = jax.random.permutation(k_p2, in_dim)
    c = perm_in[c].reshape(2, out_dim).astype(jnp.int32)
    idx_a, idx_b = c[0], c[1]
    weights = jax.random.normal(k_w, (out_dim, 16), dtype=jnp.float32)
    x = jax.random.uniform(k_x, (batch, in_dim), dtype=jnp.float32)
    return x, weights, idx_a, idx_b


if __name__ == "__main__":
    key = jax.random.PRNGKey(0)
    k1, k2, k3 = jax.random.split(key, 3)

    # Case 1: small shapes matching the module layout ([batch, in_dim]).
    x, w, ia, ib = _make_inputs(k1, batch=8, in_dim=32, out_dim=128)
    ref = logic_layer_reference(x, w, ia, ib)

    # Default (perf) path: bf16 operand + output I/O, f32 math inside the kernel.
    out_bf16 = jax.block_until_ready(logic_layer_forward(x, w, ia, ib))
    assert out_bf16.shape == ref.shape and out_bf16.dtype == jnp.bfloat16
    assert jnp.allclose(out_bf16.astype(jnp.float32), ref, atol=3e-2, rtol=3e-2), \
        "bf16-I/O mismatch vs reference"

    # f32 I/O path: exact up to f32 rounding / reassociation of the affine rewrite.
    out_f32 = jax.block_until_ready(
        logic_layer_forward(x, w, ia, ib, io_dtype=jnp.float32, out_dtype=jnp.float32))
    assert out_f32.dtype == jnp.float32
    assert jnp.allclose(out_f32, ref, atol=1e-4, rtol=1e-4), "f32-I/O mismatch vs reference"

    # Case 2: exercises the 2-D (batch, out_dim) grid (tile split keeps >=2 grid steps).
    x2, w2, ia2, ib2 = _make_inputs(k2, batch=48, in_dim=64, out_dim=256)
    ref2 = logic_layer_reference(x2, w2, ia2, ib2)
    out2 = jax.block_until_ready(logic_layer_forward(x2, w2, ia2, ib2))
    assert out2.shape == ref2.shape
    assert jnp.allclose(out2.astype(jnp.float32), ref2, atol=3e-2, rtol=3e-2), \
        "tiled-grid mismatch vs reference"

    # Case 3: non-divisible out_dim -> cdiv grid with a partial (masked) edge block.
    x3, w3, ia3, ib3 = _make_inputs(k3, batch=16, in_dim=32, out_dim=384)
    ref3 = logic_layer_reference(x3, w3, ia3, ib3)
    out3 = jax.block_until_ready(logic_layer_forward(x3, w3, ia3, ib3))
    assert out3.shape == ref3.shape
    assert jnp.allclose(out3.astype(jnp.float32), ref3, atol=3e-2, rtol=3e-2), \
        "partial-block mismatch vs reference"

    print("KERNEL_OK")
</pallas_src>

<mosaic_0001>
module attributes {stable_mosaic.version = 11 : i64} {
  func.func @_logic_layer_kernel(%arg0: i32, %arg1: i32, %arg2: memref<8x128xbf16, #tpu.memory_space<vmem>>, %arg3: memref<8x128xbf16, #tpu.memory_space<vmem>>, %arg4: memref<4x128xf32, #tpu.memory_space<vmem>>, %arg5: memref<8x128xbf16, #tpu.memory_space<vmem>>) attributes {dimension_semantics = [#tpu.dimension_semantics<parallel>, #tpu.dimension_semantics<parallel>], iteration_bounds = array<i64: 1, 1>, scalar_prefetch = 0 : i64, scratch_operands = 0 : i64, tpu.core_type = #tpu.core_type<tc>, window_params = [{transform_indices = @transform_0, window_bounds = array<i64: 8, 128>}, {transform_indices = @transform_1, window_bounds = array<i64: 8, 128>}, {transform_indices = @transform_2, window_bounds = array<i64: 4, 128>}, {transform_indices = @transform_3, window_bounds = array<i64: 8, 128>}]} {
    %c0 = arith.constant 0 : index
    %c0_0 = arith.constant 0 : index
    %0 = vector.load %arg2[%c0, %c0_0] : memref<8x128xbf16, #tpu.memory_space<vmem>>, vector<8x128xbf16>
    %1 = arith.extf %0 : vector<8x128xbf16> to vector<8x128xf32>
    %c0_1 = arith.constant 0 : index
    %c0_2 = arith.constant 0 : index
    %2 = vector.load %arg3[%c0_1, %c0_2] : memref<8x128xbf16, #tpu.memory_space<vmem>>, vector<8x128xbf16>
    %3 = arith.extf %2 : vector<8x128xbf16> to vector<8x128xf32>
    %c0_3 = arith.constant 0 : index
    %c0_4 = arith.constant 0 : index
    %4 = vector.load %arg4[%c0_3, %c0_4] : memref<4x128xf32, #tpu.memory_space<vmem>>, vector<4x128xf32>
    %5 = vector.extract_strided_slice %4 {offsets = [0, 0], sizes = [1, 128], strides = [1, 1]} : vector<4x128xf32> to vector<1x128xf32>
    %6 = vector.shape_cast %5 : vector<1x128xf32> to vector<128xf32>
    %7 = vector.shape_cast %6 : vector<128xf32> to vector<1x128xf32>
    %8 = vector.extract_strided_slice %4 {offsets = [1, 0], sizes = [1, 128], strides = [1, 1]} : vector<4x128xf32> to vector<1x128xf32>
    %9 = vector.shape_cast %8 : vector<1x128xf32> to vector<128xf32>
    %10 = vector.shape_cast %9 : vector<128xf32> to vector<1x128xf32>
    %11 = vector.extract_strided_slice %4 {offsets = [2, 0], sizes = [1, 128], strides = [1, 1]} : vector<4x128xf32> to vector<1x128xf32>
    %12 = vector.shape_cast %11 : vector<1x128xf32> to vector<128xf32>
    %13 = vector.shape_cast %12 : vector<128xf32> to vector<1x128xf32>
    %14 = vector.extract_strided_slice %4 {offsets = [3, 0], sizes = [1, 128], strides = [1, 1]} : vector<4x128xf32> to vector<1x128xf32>
    %15 = vector.shape_cast %14 : vector<1x128xf32> to vector<128xf32>
    %16 = vector.shape_cast %15 : vector<128xf32> to vector<1x128xf32>
    %17 = vector.broadcast %13 : vector<1x128xf32> to vector<8x128xf32>
    %18 = arith.mulf %17, %3 : vector<8x128xf32>
    %19 = vector.broadcast %7 : vector<1x128xf32> to vector<8x128xf32>
    %20 = arith.addf %19, %18 : vector<8x128xf32>
    %21 = vector.broadcast %16 : vector<1x128xf32> to vector<8x128xf32>
    %22 = arith.mulf %21, %3 : vector<8x128xf32>
    %23 = vector.broadcast %10 : vector<1x128xf32> to vector<8x128xf32>
    %24 = arith.addf %23, %22 : vector<8x128xf32>
    %25 = arith.mulf %1, %24 : vector<8x128xf32>
    %26 = arith.addf %20, %25 : vector<8x128xf32>
    %27 = arith.truncf %26 : vector<8x128xf32> to vector<8x128xbf16>
    %c0_5 = arith.constant 0 : index
    %c0_6 = arith.constant 0 : index
    %28 = vector.load %arg5[%c0_5, %c0_6] : memref<8x128xbf16, #tpu.memory_space<vmem>>, vector<8x128xbf16>
    tpu.vector_store %arg5[%c0_5, %c0_6], %27 {strides = array<i32>} : memref<8x128xbf16, #tpu.memory_space<vmem>>, vector<8x128xbf16>,
    return
  }
  func.func @transform_0(%arg0: i32, %arg1: i32) -> (i32, i32) {
    %c0_i32 = arith.constant 0 : i32
    return %arg0, %arg1 : i32, i32
  }
  func.func @transform_1(%arg0: i32, %arg1: i32) -> (i32, i32) {
    %c0_i32 = arith.constant 0 : i32
    return %arg0, %arg1 : i32, i32
  }
  func.func @transform_2(%arg0: i32, %arg1: i32) -> (i32, i32) {
    %c0_i32 = arith.constant 0 : i32
    %c0_i32_0 = arith.constant 0 : i32
    return %c0_i32, %arg1 : i32, i32
  }
  func.func @transform_3(%arg0: i32, %arg1: i32) -> (i32, i32) {
    %c0_i32 = arith.constant 0 : i32
    return %arg0, %arg1 : i32, i32
  }
}

</mosaic_0001>

<bundles_post_ra>
// kernel: tpu_custom_call.1
= control target key start
LH: loop header
LB: loop body
LE: loop exit
PB: predicated region body
PF: predicated region fallthrough
CT: control target
= control target key end

     0   :  { %8 = vsyncpa [#allocation3], 0  ;;  %s221_s0 = inlined_call_operand.hbm [shape: bf16[8,128], index: 0, kind: input, shape index: {}]   ;;  %s222_s1 = inlined_call_operand.hbm [shape: bf16[8,128], index: 1, kind: input, shape index: {}]   ;;  %s223_s2 = inlined_call_operand.vmem [shape: f32[4,128], index: 2, kind: input, shape index: {}]   ;;  %s224_s3 = inlined_call_operand.hbm [shape: bf16[8,128], index: 3, kind: output, shape index: {}]  }
   0x1   :  { %9 = vsyncpa [#allocation6], 0 }
   0x2   :  { %10 = vsyncpa [#allocation4], 0  ;;  %s159_s12 = smov [#allocation2]   ;;  %s160_s14 = smov [#allocation5]  }
   0x3   :  { %s17_s13 = sshll.u32 %s159_s12, 4  ;;  %s27_s15 = sshll.u32 %s160_s14, 4  ;;  %s18_s13 = int_to_ptr.vmem [resolvable:$true] %s17_s13  ;;  %s28_s15 = int_to_ptr.vmem [resolvable:$true] %s27_s15 }
   0x4   :  { %s87_s18 = scalar_lea.hbm %s221_s0, 64 }
   0x5   :  { %p88_p0 = scmp.ne.s32.totalorder %s221_s0, %s87_s18  ;;  %p91_p1 = scmp.lt.u32.totalorder %s87_s18, %s221_s0 }
   0x7   :  { %p93_p2 = pnand %p91_p1, %p88_p0 }
   0x9   :  { %96 = shalt.err (!%p93_p2)
}
   0xa   :  { %s97_s23 = scalar_lea.vmem %s18_s13, 64  ;;  %p102_p4 = scmp.lt.s32.totalorder %s18_s13, %s18_s13 }
   0xb   :  { %p98_p3 = scmp.ne.s32.totalorder %s18_s13, %s97_s23  ;;  %p103_p5 = scmp.lt.s32.totalorder %s97_s23, %s97_s23 }
   0xd   :  { %p104_p6 = por %p103_p5, %p102_p4 }
   0xf   :  { %p105_p7 = pnand %p104_p6, %p98_p3 }
  0x11   :  { %108 = shalt.err (!%p105_p7)
}
  0x12   :  { %20 = dma.hbm_to_vmem [thread:$0]  %s221_s0, 64, %s18_s13, [#allocation3]  }
  0x13   :  { %s109_s28 = scalar_lea.hbm %s222_s1, 64 }
  0x14   :  { %p110_p8 = scmp.ne.s32.totalorder %s222_s1, %s109_s28  ;;  %p113_p9 = scmp.lt.u32.totalorder %s109_s28, %s222_s1 }
  0x16   :  { %p115_p10 = pnand %p113_p9, %p110_p8 }
  0x18   :  { %118 = shalt.err (!%p115_p10)
}
  0x19   :  { %s119_s6 = scalar_lea.vmem %s28_s15, 64  ;;  %p124_p12 = scmp.lt.s32.totalorder %s28_s15, %s28_s15 }
  0x1a   :  { %p120_p11 = scmp.ne.s32.totalorder %s28_s15, %s119_s6  ;;  %p125_p13 = scmp.lt.s32.totalorder %s119_s6, %s119_s6 }
  0x1c   :  { %p126_p0 = por %p125_p13, %p124_p12 }
  0x1e   :  { %p127_p1 = pnand %p126_p0, %p120_p11 }
  0x20   :  { %130 = shalt.err (!%p127_p1)
}
  0x21   :  { %30 = dma.hbm_to_vmem [thread:$0]  %s222_s1, 64, %s28_s15, [#allocation6]  }
  0x22   :  { %153 = dma.done.wait [#allocation3], 64  }
  0x23   :  { %154 = vsyncadd [#allocation3], 4294967232 }
  0x24   :  { %155 = dma.done.wait [#allocation6], 64  }
  0x25   :  { %156 = vsyncadd [#allocation6], 4294967232  ;;  %v44_v0 = vlaneseq  ;;  %v41_v6 = vld [vmem:[#allocation5] sm:$0xf]  ;;  %v43_v7 = vld [vmem:[%s223_s2] sm:$0xf] }
  0x26   :  { %v39_v8 = vld [vmem:[#allocation2] sm:$0xf]  ;;  %v42_v9 = vunpack.c.l.bf16 %v41_v6  ;;  %s161_s1 = smov [#allocation7]  }
  0x27   :  { %v45_v1 = vshrl.u32 %v44_v0, 7  ;;  %v40_v15 = vunpack.c.l.bf16 %v39_v8  ;;  %s74_s10 = sshll.u32 %s161_s1, 4  ;;  %s75_s10 = int_to_ptr.vmem [resolvable:$true] %s74_s10 }
  0x28   :  { %s131_s11 = scalar_lea.vmem %s75_s10, 64  ;;  %p136_p3 = scmp.lt.s32.totalorder %s75_s10, %s75_s10 }
  0x29   :  { %v46_v2 = vsub.s32 2, %v45_v1  ;;  %v51_v3 = vsub.s32 0, %v45_v1  ;;  %v56_v4 = vsub.s32 3, %v45_v1  ;;  %v61_v5 = vsub.s32 1, %v45_v1  ;;  %p132_p2 = scmp.ne.s32.totalorder %s75_s10, %s131_s11  ;;  %p137_p4 = scmp.lt.s32.totalorder %s131_s11, %s131_s11 }
  0x2b   :  { %v47_v10 = vrot.slane %v43_v7, %v46_v2  ;;  %v52_v11 = vrot.slane %v43_v7, %v51_v3  ;;  %v57_v12 = vrot.slane %v43_v7, %v56_v4  ;;  %v62_v13 = vrot.slane %v43_v7, %v61_v5  ;;  %p138_p5 = por %p137_p4, %p136_p3 }
  0x2d   :  { %v48_v14 = vmul.f32 %v47_v10, %v42_v9  ;;  %v58_v16 = vmul.f32 %v57_v12, %v42_v9  ;;  %p139_p6 = pnand %p138_p5, %p132_p2 }
  0x2f   :  { %v53_v17 = vadd.f32 %v52_v11, %v48_v14  ;;  %v63_v18 = vadd.f32 %v62_v13, %v58_v16 }
  0x31   :  { %v64_v19 = vmul.f32 %v63_v18, %v40_v15 }
  0x33   :  { %v65_v20 = vadd.f32 %v64_v19, %v53_v17 }
  0x35   :  { %v66_v21 = vpack.c.bf16 %v65_v20, %v65_v20 }
  0x37   :  { %67 = vst [vmem:[#allocation7] sm:$0xf] %v66_v21 }
  0x38   :  { %142 = shalt.err (!%p139_p6)
}
  0x39   :  { %s143_s13 = scalar_lea.hbm %s224_s3, 64 }
  0x3a   :  { %p144_p7 = scmp.ne.s32.totalorder %s224_s3, %s143_s13  ;;  %p147_p8 = scmp.lt.u32.totalorder %s143_s13, %s224_s3 }
  0x3c   :  { %p149_p9 = pnand %p147_p8, %p144_p7 }
  0x3e   :  { %152 = shalt.err (!%p149_p9)
}
  0x3f   :  { %77 = dma.vmem_to_hbm [thread:$0]  %s75_s10, 64, %s224_s3, [#allocation4]  }
  0x40   :  { %157 = dma.done.wait [#allocation4], 64  }
  0x41   :  { %158 = vsyncadd [#allocation4], 4294967232 }
  0x42   :  { %81 = vsyncpa [#allocation3], 1 }
  0x43   :  { %82 = vsyncpa [#allocation6], 1 }
  0x44   :  { %83 = vsyncpa [#allocation4], 1 }

</bundles_post_ra>
